<compile_context>
chip_gen: v5e
topology: v5e:2x2
jax: 0.10.0
libtpu: 0.0.40
codegen_flags: <defaults>
</compile_context>

<pallas_src>
import jax
import jax.numpy as jnp
from jax import lax
from jax.experimental import pallas as pl
from jax.experimental.pallas import tpu as pltpu


def _round_up(x, m):
    return ((x + m - 1) // m) * m


def _make_layernorm(H, H_pad, eps):
    inv_h = 1.0 / float(H)
    need_mask = H_pad > H

    def layernorm(x, g, b):
        # x: (TQ, H_pad) float32; padded columns (if any) are exactly zero, so the
        # sum over H_pad equals the sum over the real H columns.
        mean = jnp.sum(x, axis=-1, keepdims=True) * inv_h
        xc = x - mean
        if need_mask:
            lane = lax.broadcasted_iota(jnp.int32, x.shape, x.ndim - 1)
            xc = jnp.where(lane < H, xc, 0.0)
        var = jnp.sum(xc * xc, axis=-1, keepdims=True) * inv_h
        inv = lax.rsqrt(var + eps)
        return xc * inv * g + b

    return layernorm


def _make_resident_kernel(TQ, H, H_pad, eps):
    layernorm = _make_layernorm(H, H_pad, eps)

    def kernel(ids_ref, w_ref, pos_ref, g_ref, b_ref, o_ref, gbuf):
        t = pl.program_id(0)          # seq-tile index (outer grid axis)
        b = pl.program_id(1)          # batch index (inner -> pos tile stays resident)
        base = b * (pl.num_programs(0) * TQ) + t * TQ

        # Gather TQ word rows from the VMEM-resident table (ids live in SMEM).
        # Unrolled in chunks of 8 so scalar address math co-issues with the loads.
        @pl.loop(0, TQ // 8)
        def _(c):
            r0 = pl.multiple_of(c * 8, 8)
            for u in range(8):
                r = r0 + u
                row = ids_ref[base + r]
                gbuf[pl.ds(r, 1), :] = w_ref[pl.ds(row, 1), :]

        x = gbuf[...].astype(jnp.float32) + pos_ref[...].astype(jnp.float32)
        y = layernorm(x, g_ref[...].astype(jnp.float32), b_ref[...].astype(jnp.float32))
        o_ref[...] = y.astype(o_ref.dtype)
        # TODO(synk): dropout omitted (module used in eval mode -> identity).

    return kernel


def _make_streamed_kernel(H, H_pad, eps):
    layernorm = _make_layernorm(H, H_pad, eps)

    def kernel(we_ref, pos_ref, g_ref, b_ref, o_ref):
        x = we_ref[...].astype(jnp.float32) + pos_ref[...].astype(jnp.float32)
        y = layernorm(x, g_ref[...].astype(jnp.float32), b_ref[...].astype(jnp.float32))
        o_ref[...] = y.astype(o_ref.dtype)

    return kernel


def bert_embeddings(input_ids, word_emb, pos_emb, gamma, beta, position_ids=None, *,
                    tq=256, eps=1e-6, out_dtype=None,
                    vmem_table_budget_bytes=40 * 1024 * 1024):
    """Fused embedding-lookup + add + LayerNorm (BertEmbeddings.forward, eval)."""
    B, S = input_ids.shape
    V, H = word_emb.shape
    P = pos_emb.shape[0]
    if out_dtype is None:
        out_dtype = word_emb.dtype

    # Lane-dense last dim (sub-128 output stores would be masked vst).
    H_pad = _round_up(H, 128)

    # Tokens per grid step: multiple of 8 sublanes, default 256, capped by S.
    TQ = max(8, min(int(tq), _round_up(S, 8)))
    TQ = _round_up(TQ, 8)
    S_pad = _round_up(S, TQ)
    T = S_pad // TQ

    def pad_cols(a):
        if H_pad > H:
            a = jnp.pad(a, [(0, 0)] * (a.ndim - 1) + [(0, H_pad - H)])
        return a

    # Positional rows: positions broadcast over batch, so the kernel reads a
    # contiguous static slice (plain streamed BlockSpec, no gather DMA).
    if position_ids is None:
        assert P >= S, "max_position_embeddings must be >= sequence length"
        pos_rows = jnp.arange(S, dtype=jnp.int32)
    else:
        # TODO(synk): per-batch-varying position_ids are not supported by this
        # fused path; only the (broadcast) first row is honored.
        pos_rows = jnp.asarray(position_ids).astype(jnp.int32).reshape(-1, S)[0]
    pos_eff = pad_cols(jnp.take(pos_emb, jnp.clip(pos_rows, 0, P - 1), axis=0))
    if S_pad > S:
        pos_eff = jnp.pad(pos_eff, ((0, S_pad - S), (0, 0)))

    # ids clamped so gathers never go OOB; padded tokens reuse row 0 (sliced off).
    ids = jnp.clip(input_ids.astype(jnp.int32), 0, V - 1)
    if S_pad > S:
        ids = jnp.pad(ids, ((0, 0), (0, S_pad - S)))

    gamma2 = pad_cols(gamma.reshape(1, H).astype(jnp.float32))
    beta2 = pad_cols(beta.reshape(1, H).astype(jnp.float32))
    word_p = pad_cols(word_emb)

    w_bytes = V * H_pad * jnp.dtype(word_p.dtype).itemsize
    tile = TQ * H_pad
    # Conservative: assume the constant-index table block is still double-buffered.
    resident = 2 * w_bytes <= vmem_table_budget_bytes

    vmem_need = (2 * tile * jnp.dtype(pos_eff.dtype).itemsize   # pos tile (dbl buf)
                 + 2 * tile * jnp.dtype(out_dtype).itemsize     # out tile (dbl buf)
                 + 8 * H_pad * 4)                               # gamma / beta
    if resident:
        vmem_need += 2 * w_bytes + tile * jnp.dtype(word_p.dtype).itemsize
    else:
        vmem_need += 2 * tile * jnp.dtype(word_p.dtype).itemsize
    vmem_limit = int(min(max(vmem_need + (2 << 20), 16 << 20), 100 << 20))

    compiler_params = pltpu.CompilerParams(
        dimension_semantics=("parallel", "parallel"),
        vmem_limit_bytes=vmem_limit,
    )
    out_shape = jax.ShapeDtypeStruct((B, S_pad, H_pad), out_dtype)

    if resident:
        kernel = _make_resident_kernel(TQ, H, H_pad, float(eps))
        out = pl.pallas_call(
            kernel,
            out_shape=out_shape,
            grid_spec=pltpu.PrefetchScalarGridSpec(
                num_scalar_prefetch=1,                 # ids -> SMEM
                grid=(T, B),                           # batch innermost
                in_specs=[
                    # Word table: one block = whole table, constant index ->
                    # DMA'd once, stays VMEM-resident for the whole grid.
                    pl.BlockSpec((V, H_pad), lambda t, b, ids: (0, 0)),
                    # Positional tile: depends only on the outer axis t ->
                    # resident across the inner batch loop (fetched T times).
                    pl.BlockSpec((TQ, H_pad), lambda t, b, ids: (t, 0)),
                    # LayerNorm gamma / beta (same block every step -> resident).
                    pl.BlockSpec((1, H_pad), lambda t, b, ids: (0, 0)),
                    pl.BlockSpec((1, H_pad), lambda t, b, ids: (0, 0)),
                ],
                out_specs=pl.BlockSpec((None, TQ, H_pad), lambda t, b, ids: (b, t, 0)),
                scratch_shapes=[pltpu.VMEM((TQ, H_pad), word_p.dtype)],
            ),
            compiler_params=compiler_params,
        )(ids.reshape(-1), word_p, pos_eff, gamma2, beta2)
    else:
        # TODO(synk): very large vocab tables fall back to an XLA gather feeding
        # the same fused add+LayerNorm kernel; a manual double-buffered HBM row
        # gather would avoid materializing the gathered rows in HBM.
        gathered = jnp.take(word_p, ids, axis=0)        # (B, S_pad, H_pad)
        kernel = _make_streamed_kernel(H, H_pad, float(eps))
        out = pl.pallas_call(
            kernel,
            out_shape=out_shape,
            grid_spec=pltpu.PrefetchScalarGridSpec(
                num_scalar_prefetch=0,
                grid=(T, B),
                in_specs=[
                    pl.BlockSpec((None, TQ, H_pad), lambda t, b: (b, t, 0)),
                    pl.BlockSpec((TQ, H_pad), lambda t, b: (t, 0)),
                    pl.BlockSpec((1, H_pad), lambda t, b: (0, 0)),
                    pl.BlockSpec((1, H_pad), lambda t, b: (0, 0)),
                ],
                out_specs=pl.BlockSpec((None, TQ, H_pad), lambda t, b: (b, t, 0)),
            ),
            compiler_params=compiler_params,
        )(gathered, pos_eff, gamma2, beta2)

    return out[:, :S, :H]


def _reference(input_ids, word_emb, pos_emb, gamma, beta, eps=1e-6):
    S = input_ids.shape[1]
    x = word_emb[input_ids] + pos_emb[jnp.arange(S)][None, :, :]
    mean = jnp.mean(x, axis=-1, keepdims=True)
    var = jnp.mean((x - mean) ** 2, axis=-1, keepdims=True)
    return (x - mean) / jnp.sqrt(var + eps) * gamma + beta


if __name__ == "__main__":
    # Small shapes consistent with UViT's token_emb (BertEmbeddings) forward.
    vocab_size = 50                 # codebook_size + 1 analogue (small)
    hidden_size = 32                # embed_dim analogue (small)
    max_position_embeddings = 16    # num_vis_tokens analogue (small)
    B, S = 2, 12                    # exercises seq padding (S_pad = 16)

    key = jax.random.PRNGKey(0)
    k_w, k_p, k_g, k_b, k_ids = jax.random.split(key, 5)

    # nn.Embedding weights init'd with normal(std=0.02); LayerNorm params perturbed
    # slightly so scale/shift are actually exercised.
    word_emb = (0.02 * jax.random.normal(k_w, (vocab_size, hidden_size))).astype(jnp.float32)
    pos_emb = (0.02 * jax.random.normal(k_p, (max_position_embeddings, hidden_size))).astype(jnp.float32)
    gamma = (1.0 + 0.1 * jax.random.normal(k_g, (hidden_size,))).astype(jnp.float32)
    beta = (0.1 * jax.random.normal(k_b, (hidden_size,))).astype(jnp.float32)

    input_ids = jax.random.randint(k_ids, (B, S), 0, vocab_size, dtype=jnp.int32)

    ref = _reference(input_ids, word_emb, pos_emb, gamma, beta)

    # VMEM-resident table, single seq-tile (TQ=16, grid (1, 2)).
    out_a = jax.block_until_ready(
        bert_embeddings(input_ids, word_emb, pos_emb, gamma, beta))
    # VMEM-resident table, multi-tile path (TQ=8, grid (2, 2)) -> pos residency
    # across the inner batch axis is exercised.
    out_b = jax.block_until_ready(
        bert_embeddings(input_ids, word_emb, pos_emb, gamma, beta, tq=8))
    # Oversized-table fallback path (wrapper gather + fused add+LayerNorm).
    out_c = jax.block_until_ready(
        bert_embeddings(input_ids, word_emb, pos_emb, gamma, beta,
                        vmem_table_budget_bytes=0))

    for out in (out_a, out_b, out_c):
        assert out.shape == (B, S, hidden_size)
        assert jnp.allclose(out, ref, atol=2e-5, rtol=1e-5), \
            float(jnp.max(jnp.abs(out - ref)))

    print("KERNEL_OK")
</pallas_src>

<mosaic_0001>
module attributes {stable_mosaic.version = 11 : i64} {
  func.func @kernel(%arg0: i32, %arg1: i32, %arg2: memref<32xi32, #tpu.memory_space<smem>>, %arg3: memref<50x128xf32, #tpu.memory_space<vmem>>, %arg4: memref<16x128xf32, #tpu.memory_space<vmem>>, %arg5: memref<1x128xf32, #tpu.memory_space<vmem>>, %arg6: memref<1x128xf32, #tpu.memory_space<vmem>>, %arg7: memref<1x16x128xf32, #tpu.memory_space<vmem>>, %arg8: memref<16x128xf32, #tpu.memory_space<vmem>>) attributes {dimension_semantics = [#tpu.dimension_semantics<parallel>, #tpu.dimension_semantics<parallel>], iteration_bounds = array<i64: 1, 2>, scalar_prefetch = 1 : i64, scratch_operands = 1 : i64, tpu.core_type = #tpu.core_type<tc>, window_params = [{pipeline_mode = #tpu.pipeline_mode<synchronous>, transform_indices = @transform_0, window_bounds = array<i64: 50, 128>}, {transform_indices = @transform_1, window_bounds = array<i64: 16, 128>}, {pipeline_mode = #tpu.pipeline_mode<synchronous>, transform_indices = @transform_2, window_bounds = array<i64: 1, 128>}, {pipeline_mode = #tpu.pipeline_mode<synchronous>, transform_indices = @transform_3, window_bounds = array<i64: 1, 128>}, {transform_indices = @transform_4, window_bounds = array<i64: 1, 16, 128>}]} {
    %c16_i32 = arith.constant 16 : i32
    %0 = arith.muli %arg1, %c16_i32 : i32
    %c16_i32_0 = arith.constant 16 : i32
    %1 = arith.muli %arg0, %c16_i32_0 : i32
    %2 = arith.addi %0, %1 : i32
    %c0_i32 = arith.constant 0 : i32
    %c2_i32 = arith.constant 2 : i32
    %3 = arith.addi %c0_i32, %c2_i32 : i32
    %c1_i32 = arith.constant 1 : i32
    scf.for %arg9 = %c0_i32 to %3 step %c1_i32  : i32 {
      %c1_i32_17 = arith.constant 1 : i32
      %37 = arith.muli %arg9, %c1_i32_17 : i32
      %c0_i32_18 = arith.constant 0 : i32
      %38 = arith.addi %c0_i32_18, %37 : i32
      %c8_i32 = arith.constant 8 : i32
      %39 = arith.muli %38, %c8_i32 : i32
      %40 = tpu.assume_multiple %39, 8 : i32
      %c0_i32_19 = arith.constant 0 : i32
      %41 = arith.addi %40, %c0_i32_19 : i32
      %42 = arith.addi %2, %41 : i32
      %43 = arith.index_cast %42 : i32 to index
      %44 = memref.load %arg2[%43] : memref<32xi32, #tpu.memory_space<smem>>
      %45 = arith.index_cast %44 : i32 to index
      %c0_20 = arith.constant 0 : index
      %46 = vector.load %arg3[%45, %c0_20] : memref<50x128xf32, #tpu.memory_space<vmem>>, vector<1x128xf32>
      %47 = arith.index_cast %41 : i32 to index
      %c0_21 = arith.constant 0 : index
      %48 = vector.load %arg8[%47, %c0_21] : memref<16x128xf32, #tpu.memory_space<vmem>>, vector<1x128xf32>
      tpu.vector_store %arg8[%47, %c0_21], %46 {strides = array<i32>} : memref<16x128xf32, #tpu.memory_space<vmem>>, vector<1x128xf32>,
      %c1_i32_22 = arith.constant 1 : i32
      %49 = arith.addi %40, %c1_i32_22 : i32
      %50 = arith.addi %2, %49 : i32
      %51 = arith.index_cast %50 : i32 to index
      %52 = memref.load %arg2[%51] : memref<32xi32, #tpu.memory_space<smem>>
      %53 = arith.index_cast %52 : i32 to index
      %c0_23 = arith.constant 0 : index
      %54 = vector.load %arg3[%53, %c0_23] : memref<50x128xf32, #tpu.memory_space<vmem>>, vector<1x128xf32>
      %55 = arith.index_cast %49 : i32 to index
      %c0_24 = arith.constant 0 : index
      %56 = vector.load %arg8[%55, %c0_24] : memref<16x128xf32, #tpu.memory_space<vmem>>, vector<1x128xf32>
      tpu.vector_store %arg8[%55, %c0_24], %54 {strides = array<i32>} : memref<16x128xf32, #tpu.memory_space<vmem>>, vector<1x128xf32>,
      %c2_i32_25 = arith.constant 2 : i32
      %57 = arith.addi %40, %c2_i32_25 : i32
      %58 = arith.addi %2, %57 : i32
      %59 = arith.index_cast %58 : i32 to index
      %60 = memref.load %arg2[%59] : memref<32xi32, #tpu.memory_space<smem>>
      %61 = arith.index_cast %60 : i32 to index
      %c0_26 = arith.constant 0 : index
      %62 = vector.load %arg3[%61, %c0_26] : memref<50x128xf32, #tpu.memory_space<vmem>>, vector<1x128xf32>
      %63 = arith.index_cast %57 : i32 to index
      %c0_27 = arith.constant 0 : index
      %64 = vector.load %arg8[%63, %c0_27] : memref<16x128xf32, #tpu.memory_space<vmem>>, vector<1x128xf32>
      tpu.vector_store %arg8[%63, %c0_27], %62 {strides = array<i32>} : memref<16x128xf32, #tpu.memory_space<vmem>>, vector<1x128xf32>,
      %c3_i32 = arith.constant 3 : i32
      %65 = arith.addi %40, %c3_i32 : i32
      %66 = arith.addi %2, %65 : i32
      %67 = arith.index_cast %66 : i32 to index
      %68 = memref.load %arg2[%67] : memref<32xi32, #tpu.memory_space<smem>>
      %69 = arith.index_cast %68 : i32 to index
      %c0_28 = arith.constant 0 : index
      %70 = vector.load %arg3[%69, %c0_28] : memref<50x128xf32, #tpu.memory_space<vmem>>, vector<1x128xf32>
      %71 = arith.index_cast %65 : i32 to index
      %c0_29 = arith.constant 0 : index
      %72 = vector.load %arg8[%71, %c0_29] : memref<16x128xf32, #tpu.memory_space<vmem>>, vector<1x128xf32>
      tpu.vector_store %arg8[%71, %c0_29], %70 {strides = array<i32>} : memref<16x128xf32, #tpu.memory_space<vmem>>, vector<1x128xf32>,
      %c4_i32 = arith.constant 4 : i32
      %73 = arith.addi %40, %c4_i32 : i32
      %74 = arith.addi %2, %73 : i32
      %75 = arith.index_cast %74 : i32 to index
      %76 = memref.load %arg2[%75] : memref<32xi32, #tpu.memory_space<smem>>
      %77 = arith.index_cast %76 : i32 to index
      %c0_30 = arith.constant 0 : index
      %78 = vector.load %arg3[%77, %c0_30] : memref<50x128xf32, #tpu.memory_space<vmem>>, vector<1x128xf32>
      %79 = arith.index_cast %73 : i32 to index
      %c0_31 = arith.constant 0 : index
      %80 = vector.load %arg8[%79, %c0_31] : memref<16x128xf32, #tpu.memory_space<vmem>>, vector<1x128xf32>
      tpu.vector_store %arg8[%79, %c0_31], %78 {strides = array<i32>} : memref<16x128xf32, #tpu.memory_space<vmem>>, vector<1x128xf32>,
      %c5_i32 = arith.constant 5 : i32
      %81 = arith.addi %40, %c5_i32 : i32
      %82 = arith.addi %2, %81 : i32
      %83 = arith.index_cast %82 : i32 to index
      %84 = memref.load %arg2[%83] : memref<32xi32, #tpu.memory_space<smem>>
      %85 = arith.index_cast %84 : i32 to index
      %c0_32 = arith.constant 0 : index
      %86 = vector.load %arg3[%85, %c0_32] : memref<50x128xf32, #tpu.memory_space<vmem>>, vector<1x128xf32>
      %87 = arith.index_cast %81 : i32 to index
      %c0_33 = arith.constant 0 : index
      %88 = vector.load %arg8[%87, %c0_33] : memref<16x128xf32, #tpu.memory_space<vmem>>, vector<1x128xf32>
      tpu.vector_store %arg8[%87, %c0_33], %86 {strides = array<i32>} : memref<16x128xf32, #tpu.memory_space<vmem>>, vector<1x128xf32>,
      %c6_i32 = arith.constant 6 : i32
      %89 = arith.addi %40, %c6_i32 : i32
      %90 = arith.addi %2, %89 : i32
      %91 = arith.index_cast %90 : i32 to index
      %92 = memref.load %arg2[%91] : memref<32xi32, #tpu.memory_space<smem>>
      %93 = arith.index_cast %92 : i32 to index
      %c0_34 = arith.constant 0 : index
      %94 = vector.load %arg3[%93, %c0_34] : memref<50x128xf32, #tpu.memory_space<vmem>>, vector<1x128xf32>
      %95 = arith.index_cast %89 : i32 to index
      %c0_35 = arith.constant 0 : index
      %96 = vector.load %arg8[%95, %c0_35] : memref<16x128xf32, #tpu.memory_space<vmem>>, vector<1x128xf32>
      tpu.vector_store %arg8[%95, %c0_35], %94 {strides = array<i32>} : memref<16x128xf32, #tpu.memory_space<vmem>>, vector<1x128xf32>,
      %c7_i32 = arith.constant 7 : i32
      %97 = arith.addi %40, %c7_i32 : i32
      %98 = arith.addi %2, %97 : i32
      %99 = arith.index_cast %98 : i32 to index
      %100 = memref.load %arg2[%99] : memref<32xi32, #tpu.memory_space<smem>>
      %101 = arith.index_cast %100 : i32 to index
      %c0_36 = arith.constant 0 : index
      %102 = vector.load %arg3[%101, %c0_36] : memref<50x128xf32, #tpu.memory_space<vmem>>, vector<1x128xf32>
      %103 = arith.index_cast %97 : i32 to index
      %c0_37 = arith.constant 0 : index
      %104 = vector.load %arg8[%103, %c0_37] : memref<16x128xf32, #tpu.memory_space<vmem>>, vector<1x128xf32>
      tpu.vector_store %arg8[%103, %c0_37], %102 {strides = array<i32>} : memref<16x128xf32, #tpu.memory_space<vmem>>, vector<1x128xf32>,
    }
    %c2_i32_1 = arith.constant 2 : i32
    %c0 = arith.constant 0 : index
    %c0_2 = arith.constant 0 : index
    %4 = vector.load %arg8[%c0, %c0_2] : memref<16x128xf32, #tpu.memory_space<vmem>>, vector<16x128xf32>
    %c0_3 = arith.constant 0 : index
    %c0_4 = arith.constant 0 : index
    %5 = vector.load %arg4[%c0_3, %c0_4] : memref<16x128xf32, #tpu.memory_space<vmem>>, vector<16x128xf32>
    %6 = arith.addf %4, %5 : vector<16x128xf32>
    %c0_5 = arith.constant 0 : index
    %c0_6 = arith.constant 0 : index
    %7 = vector.load %arg5[%c0_5, %c0_6] : memref<1x128xf32, #tpu.memory_space<vmem>>, vector<1x128xf32>
    %c0_7 = arith.constant 0 : index
    %c0_8 = arith.constant 0 : index
    %8 = vector.load %arg6[%c0_7, %c0_8] : memref<1x128xf32, #tpu.memory_space<vmem>>, vector<1x128xf32>
    %cst = arith.constant dense<0.000000e+00> : vector<16xf32>
    %9 = vector.multi_reduction <add>, %6, %cst [1] : vector<16x128xf32> to vector<16xf32>
    %10 = vector.shape_cast %9 : vector<16xf32> to vector<16x1xf32>
    %cst_9 = arith.constant 3.125000e-02 : f32
    %11 = vector.broadcast %cst_9 : f32 to vector<16x1xf32>
    %12 = arith.mulf %10, %11 : vector<16x1xf32>
    %13 = vector.broadcast %12 : vector<16x1xf32> to vector<16x128xf32>
    %14 = arith.subf %6, %13 : vector<16x128xf32>
    %15 = tpu.iota {dimensions = array<i32: 1>} : vector<16x128xi32>
    %c32_i32 = arith.constant 32 : i32
    %16 = vector.broadcast %c32_i32 : i32 to vector<16x128xi32>
    %17 = arith.cmpi slt, %15, %16 : vector<16x128xi32>
    %cst_10 = arith.constant 0.000000e+00 : f32
    %18 = vector.broadcast %cst_10 : f32 to vector<16x128xf32>
    %19 = arith.select %17, %14, %18 : vector<16x128xi1>, vector<16x128xf32>
    %20 = arith.mulf %19, %19 : vector<16x128xf32>
    %cst_11 = arith.constant dense<0.000000e+00> : vector<16xf32>
    %21 = vector.multi_reduction <add>, %20, %cst_11 [1] : vector<16x128xf32> to vector<16xf32>
    %22 = vector.shape_cast %21 : vector<16xf32> to vector<16x1xf32>
    %cst_12 = arith.constant 3.125000e-02 : f32
    %23 = vector.broadcast %cst_12 : f32 to vector<16x1xf32>
    %24 = arith.mulf %22, %23 : vector<16x1xf32>
    %cst_13 = arith.constant 9.99999997E-7 : f32
    %25 = vector.broadcast %cst_13 : f32 to vector<16x1xf32>
    %26 = arith.addf %24, %25 : vector<16x1xf32>
    %27 = math.rsqrt %26 : vector<16x1xf32>
    %28 = vector.broadcast %27 : vector<16x1xf32> to vector<16x128xf32>
    %29 = arith.mulf %19, %28 : vector<16x128xf32>
    %30 = vector.broadcast %7 : vector<1x128xf32> to vector<16x128xf32>
    %31 = arith.mulf %29, %30 : vector<16x128xf32>
    %32 = vector.broadcast %8 : vector<1x128xf32> to vector<16x128xf32>
    %33 = arith.addf %31, %32 : vector<16x128xf32>
    %c0_14 = arith.constant 0 : index
    %c0_15 = arith.constant 0 : index
    %c0_16 = arith.constant 0 : index
    %34 = vector.load %arg7[%c0_14, %c0_15, %c0_16] : memref<1x16x128xf32, #tpu.memory_space<vmem>>, vector<1x16x128xf32>
    %35 = vector.shape_cast %34 : vector<1x16x128xf32> to vector<16x128xf32>
    %36 = vector.shape_cast %33 : vector<16x128xf32> to vector<1x16x128xf32>
    tpu.vector_store %arg7[%c0_14, %c0_15, %c0_16], %36 {strides = array<i32>} : memref<1x16x128xf32, #tpu.memory_space<vmem>>, vector<1x16x128xf32>,
    return
  }
  func.func @transform_0(%arg0: i32, %arg1: i32, %arg2: memref<32xi32, #tpu.memory_space<smem>>) -> (i32, i32) {
    %c0_i32 = arith.constant 0 : i32
    %c0_i32_0 = arith.constant 0 : i32
    %c0_i32_1 = arith.constant 0 : i32
    return %c0_i32, %c0_i32_0 : i32, i32
  }
  func.func @transform_1(%arg0: i32, %arg1: i32, %arg2: memref<32xi32, #tpu.memory_space<smem>>) -> (i32, i32) {
    %c0_i32 = arith.constant 0 : i32
    %c0_i32_0 = arith.constant 0 : i32
    return %arg0, %c0_i32 : i32, i32
  }
  func.func @transform_2(%arg0: i32, %arg1: i32, %arg2: memref<32xi32, #tpu.memory_space<smem>>) -> (i32, i32) {
    %c0_i32 = arith.constant 0 : i32
    %c0_i32_0 = arith.constant 0 : i32
    %c0_i32_1 = arith.constant 0 : i32
    return %c0_i32, %c0_i32_0 : i32, i32
  }
  func.func @transform_3(%arg0: i32, %arg1: i32, %arg2: memref<32xi32, #tpu.memory_space<smem>>) -> (i32, i32) {
    %c0_i32 = arith.constant 0 : i32
    %c0_i32_0 = arith.constant 0 : i32
    %c0_i32_1 = arith.constant 0 : i32
    return %c0_i32, %c0_i32_0 : i32, i32
  }
  func.func @transform_4(%arg0: i32, %arg1: i32, %arg2: memref<32xi32, #tpu.memory_space<smem>>) -> (i32, i32, i32) {
    %c0_i32 = arith.constant 0 : i32
    %c0_i32_0 = arith.constant 0 : i32
    return %arg1, %arg0, %c0_i32 : i32, i32, i32
  }
}

</mosaic_0001>

<bundles_post_ra>
// kernel: tpu_custom_call.1
= control target key start
LH: loop header
LB: loop body
LE: loop exit
PB: predicated region body
PF: predicated region fallthrough
CT: control target
= control target key end

     0   :  { %s808_s21 = smov [#allocation4]   ;;  %s1014_s0 = inlined_call_operand.hbm [shape: s32[32], index: 0, kind: input, shape index: {}]   ;;  %s1015_s1 = inlined_call_operand.hbm [shape: f32[50,128], index: 1, kind: input, shape index: {}]   ;;  %s1016_s2 = inlined_call_operand.hbm [shape: f32[16,128], index: 2, kind: input, shape index: {}]   ;;  %s1017_s3 = inlined_call_operand.vmem [shape: f32[1,128], index: 3, kind: input, shape index: {}]   ;;  %s1018_s4 = inlined_call_operand.vmem [shape: f32[1,128], index: 4, kind: input, shape index: {}]   ;;  %s1019_s5 = inlined_call_operand.hbm [shape: f32[2,16,128], index: 5, kind: output, shape index: {}]  }
   0x1   :  { %1024 = sst [smem:[#allocation19_spill]] %s1015_s1  ;;  %s11_s20 = sshll.u32 %s1014_s0, 4  ;;  %s12_s20 = int_to_ptr.hbm [resolvable:$true] %s11_s20 }
   0x2   :  { %1025 = sst [smem:[#allocation20_spill]] %s1016_s2 }
   0x3   :  { %14 = dma.hbm_to_smem %s12_s20, 16, %s808_s21, [#allocation3] }
   0x4   :  { %766 = dma.done.wait [#allocation3], 16 }
   0x5   :  { %767 = vsyncadd [#allocation3], 4294967280 }
   0x6   :  { %17 = sfence }
   0x7   :  { %18 = vsyncpa [#allocation6], 0 }
   0x8   :  { %19 = vsyncpa [#allocation9], 0 }
   0x9   :  { %20 = vsyncpa [#allocation7], 0 }
   0xa   :  { %22 = vsyncpa [#allocation7 + $0x1], 0  ;;  %s848_s22 = smov 0   ;;  %s850_s23 = smov 0  }
   0xb   :  { %s852_s24 = smov 0   ;;  %s854_s25 = smov 0  }
   0xc   :  { %s856_s26 = smov 0   ;;  %s858_s0 = smov 0  }
   0xd LB: > { %1026 = sst [smem:[#allocation15_spill]] %s790_s24  ;;  %s512_s27 = sadd.s32 4294967295, %s802_s0   ;;  %s802_s0 = sphi %s858_s0, %s28_s0   ;;  %s798_s26 = sphi %s856_s26, %s1040_s26   ;;  %s794_s25 = sphi %s854_s25, %s1039_s25   ;;  %s790_s24 = sphi %s852_s24, %s1038_s24   ;;  %s786_s23 = sphi %s850_s23, %s1042_s23   ;;  %s782_s22 = sphi %s848_s22, %s1041_s22  }
   0xe   : > { %1027 = sst [smem:[#allocation16_spill]] %s798_s26  ;;  %s513_s28 = sadd.s32 4294967294, %s802_s0  }
   0xf   : > { %s37_s29 = sadd.s32 1, %s798_s26  ;;  %s138_s30 = sadd.s32 1, %s790_s24 }
  0x10   : > { %p38_p0 = scmp.ge.s32.totalorder %s37_s29, 2  ;;  %p148_p1 = scmp.ne.s32.totalorder %s790_s24, %s786_s23 }
  0x11   : > { %p149_p2 = scmp.eq.s32.totalorder %s512_s27, 1  ;;  %p154_p3 = scmp.ne.s32.totalorder %s786_s23, %s782_s22 }
  0x12   : > { %s1044_s29 = smov (%p38_p0, %s37_s29), 0  ;;  %p155_p5 = scmp.eq.s32.totalorder %s513_s28, 1 }
  0x13   : > { %1028 = sst [smem:[#allocation17_spill]] %s1044_s29  ;;  %p888_p4 = por %p149_p2, %p148_p1 }
  0x14   : > { %s133_s7 = ssub.s32 %s798_s26, %s1044_s29  ;;  %p514_p6 = scmp.ge.s32.totalorder %s802_s0, 1 }
  0x15   : > { %p136_p7 = scmp.eq.s32.totalorder %s133_s7, 0  ;;  %p895_p8 = por %p155_p5, %p154_p3 }
  0x16   : > { %p162_p9 = scmp.lt.s32.totalorder %s802_s0, 3  ;;  %p907_p11 = scmp.eq.s32.totalorder %s512_s27, 0 }
  0x17   : > { %s901_s9 = scalar_select %p136_p7, %s790_s24, %s138_s30  }
  0x18   : > { %p903_p10 = pnand %p514_p6, %p162_p9  ;;  %s1034_s1 = sld [smem:[#allocation19_spill]] }
  0x19   : > { %1031 = sst [smem:[#allocation18_spill]] %s901_s9  ;;  %s809_s15 = smov [#allocation5]  }
  0x1a   : > { %p553_p12 = pneg %p903_p10  ;;  %s175_s16 = sshll.u32 %s809_s15, 4  ;;  %s176_s16 = int_to_ptr.vmem [resolvable:$true] %s175_s16 }
  0x1b   : > { %s1035_s2 = sld [smem:[#allocation20_spill]]  ;;  %s810_s20 = smov 128  }
  0x1c   : > { %p554_p13 = pnand %p907_p11, %p553_p12  ;;  %s811_s21 = smov 8  }
  0x1d   : > { %s812_s27 = smov [#allocation8]  }
  0x1e   : > { %s173_s14 = sshll.u32 %s1034_s1, 4  ;;  %s192_s28 = sshll.u32 %s812_s27, 4  ;;  %s174_s14 = int_to_ptr.hbm [resolvable:$true] %s173_s14  ;;  %s193_s28 = int_to_ptr.vmem [resolvable:$true] %s192_s28 }
  0x1f   : > { %556 = dma.hbm_to_vmem [thread:$0]  (!%p554_p13), %s174_s14, 896, %s176_s16, [#allocation6], %s810_s20, %s810_s20, %s811_s21  }
  0x20   : > { %214 = sbr.rel (%p903_p10) target bundleno = 355 (0x163), region = 36 }
  0x21   : > { %s190_s19 = sshll.u32 %s1035_s2, 4  ;;  %s191_s19 = int_to_ptr.hbm [resolvable:$true] %s190_s19 }
  0x22   : > { %559 = dma.hbm_to_vmem [thread:$0]  (!%p554_p13), %s191_s19, 256, %s193_s28, [#allocation9], %s810_s20, %s810_s20, %s811_s21  }
  0x25   : > { %769 = dma.done.wait (%p907_p11), [#allocation6], 896  }
  0x26   : > { %771 = vsyncadd (%p907_p11), [#allocation6], 4294966400 }
  0x27   : > { %773 = dma.done.wait (%p907_p11), [#allocation9], 256  }
  0x28   : > { %775 = vsyncadd (%p907_p11), [#allocation9], 4294967040  ;;  %s1020_s30 = sand.u32 1, %s786_s23   ;;  %s933_s7 = sshll.u32 %s794_s25, 4 }
  0x29   : > { %s520_s10 = sshll.u32 %s1020_s30, 4  ;;  %s939_s13 = smov 0  }
  0x2a   : > { %s937_s12 = scalar_lea.vmem [#allocation10], %s520_s10 }
  0x2b LB: >> { %s945_s11 = sshll.u32 %s806_s13, 3  ;;  %s251_s13 = sadd.s32 1, %s806_s13   ;;  %s806_s13 = sphi %s939_s13, %s251_s13  }
  0x2c   : >> { %s253_s25 = sadd.s32 %s945_s11, %s933_s7  ;;  %s259_s15 = sadd.s32 1, %s945_s11 }
  0x2d   : >> { %s254_s14 = sld [smem:[#allocation4 + %s253_s25]]  ;;  %s260_s16 = sadd.s32 %s933_s7, %s259_s15 }
  0x2e   : >> { %s266_s17 = sadd.s32 2, %s945_s11  ;;  %s261_s18 = sld [smem:[#allocation4 + %s260_s16]] }
  0x2f   : >> { %s267_s19 = sadd.s32 %s933_s7, %s266_s17  ;;  %s273_s21 = sadd.s32 3, %s945_s11 }
  0x30   : >> { %s268_s20 = sld [smem:[#allocation4 + %s267_s19]]  ;;  %s274_s27 = sadd.s32 %s933_s7, %s273_s21 }
  0x31   : >> { %s280_s28 = sadd.s32 4, %s945_s11  ;;  %s275_s10 = sld [smem:[#allocation4 + %s274_s27]] }
  0x32   : >> { %s281_s30 = sadd.s32 %s933_s7, %s280_s28  ;;  %s287_s25 = sadd.s32 5, %s945_s11 }
  0x33   : >> { %s282_s1 = sld [smem:[#allocation4 + %s281_s30]]  ;;  %s255_s2 = scalar_lea.vmem [#allocation5], %s254_s14 }
  0x34   : >> { %v256_v0 = vld [vmem:[%s255_s2] sm:$0x1]  ;;  %s294_s29 = sadd.s32 6, %s945_s11  ;;  %s257_s26 = scalar_lea.vmem [#allocation2], %s945_s11 }
  0x35   : >> { %258 = vst [vmem:[%s257_s26] sm:$0x1] %v256_v0  ;;  %s288_s15 = sadd.s32 %s933_s7, %s287_s25  ;;  %s262_s9 = scalar_lea.vmem [#allocation5], %s261_s18 }
  0x36   : >> { %v263_v1 = vld [vmem:[%s262_s9] sm:$0x1]  ;;  %s289_s16 = sld [smem:[#allocation4 + %s288_s15]]  ;;  %s269_s17 = scalar_lea.vmem [#allocation5], %s268_s20 }
  0x37   : >> { %524 = vst [vmem:[%s257_s26 + $0x1] sm:$0x1] %v263_v1  ;;  %v270_v2 = vld [vmem:[%s269_s17] sm:$0x1]  ;;  %s295_s19 = sadd.s32 %s933_s7, %s294_s29  ;;  %s301_s21 = sadd.s32 7, %s945_s11 }
  0x38   : >> { %526 = vst [vmem:[%s257_s26 + $0x2] sm:$0x1] %v270_v2  ;;  %s296_s27 = sld [smem:[#allocation4 + %s295_s19]]  ;;  %s276_s28 = scalar_lea.vmem [#allocation5], %s275_s10 }
  0x39   : >> { %v277_v3 = vld [vmem:[%s276_s28] sm:$0x1]  ;;  %s302_s30 = sadd.s32 %s933_s7, %s301_s21  ;;  %s283_s2 = scalar_lea.vmem [#allocation5], %s282_s1 }
  0x3a   : >> { %528 = vst [vmem:[%s257_s26 + $0x3] sm:$0x1] %v277_v3  ;;  %v284_v4 = vld [vmem:[%s283_s2] sm:$0x1]  ;;  %s303_s14 = sld [smem:[#allocation4 + %s302_s30]]  ;;  %p248_p0 = scmp.ge.s32.totalorder %s251_s13, 2  }
  0x3b   : >> { %530 = vst [vmem:[%s257_s26 + $0x4] sm:$0x1] %v284_v4  ;;  %v310_v9 = vld [vmem:[#allocation8] sm:$0xff] (%p248_p0)  ;;  %v311_v12 = vld [vmem:[#allocation8 + $0x8] sm:$0xff] (%p248_p0)  ;;  %v324_v14 = vlaneseq (%p248_p0)  ;;  %v632_v40 = vld [vmem:[%s1017_s3] ss:$0 sm:$0xff] (%p248_p0)  ;;  %s387_s20 = scalar_lea.hbm (%p248_p0), %s1019_s5, %s933_s7 }
  0x3c   : >> { %s290_s24 = scalar_lea.vmem [#allocation5], %s289_s16  ;;  %v633_v44 = vld [vmem:[%s1018_s4] ss:$0 sm:$0xff] (%p248_p0)  ;;  %s388_s10 = sshll.u32 (%p248_p0), %s937_s12, 4  ;;  %s389_s10 = int_to_ptr.vmem [resolvable:$true] %s388_s10 }
  0x3d   : >> { %v291_v5 = vld [vmem:[%s290_s24] sm:$0x1]  ;;  %v325_v15 = vand.u32 (%p248_p0), 127, %v324_v14  ;;  %s390_s25 = sshll.u32 (%p248_p0), %s387_s20, 4  ;;  %s1036_s15 = sand.u32 (%p248_p0), 1, %s786_s23   ;;  %s391_s25 = int_to_ptr.hbm [resolvable:$true] %s390_s25 }
  0x3e   : >> { %532 = vst [vmem:[%s257_s26 + $0x5] sm:$0x1] %v291_v5  ;;  %s297_s9 = scalar_lea.vmem [#allocation5], %s296_s27  ;;  %250 = sbr.rel (!%p248_p0) target bundleno = 43 (0x2b), region = 101 }
  0x3f   : >> { %v298_v6 = vld [vmem:[%s297_s9] sm:$0x1]  ;;  %vm326_vm0 = vcmp.lt.s32.totalorder (%p248_p0), %v325_v15, 32  ;;  %s374_s16 = scalar_lea.sflag (%p248_p0), [#allocation7], %s1036_s15  ;;  %s724_s17 = sshra.s32 (%p248_p0), %s391_s25, 4  ;;  %s725_s17 = int_to_ptr.hbm [resolvable:$true] %s724_s17 }
  0x40   : >> { %534 = vst [vmem:[%s257_s26 + $0x6] sm:$0x1] %v298_v6  ;;  %s304_s18 = scalar_lea.vmem [#allocation5], %s303_s14  ;;  %s726_s19 = scalar_lea.hbm (%p248_p0), %s725_s17, 16 }
  0x41   : >> { %v305_v7 = vld [vmem:[%s304_s18] sm:$0x1]  ;;  %p727_p1 = scmp.ne.s32.totalorder (%p248_p0), %s725_s17, %s726_s19  ;;  %s730_s27 = scalar_lea.hbm (%p248_p0), %s1019_s5, 32 }
  0x42   : >> { %536 = vst [vmem:[%s257_s26 + $0x7] sm:$0x1] %v305_v7  ;;  %p731_p5 = scmp.lt.s32.totalorder (%p248_p0), %s725_s17, %s1019_s5  ;;  %p732_p6 = scmp.lt.s32.totalorder (%p248_p0), %s730_s27, %s726_s19 }
  0x43   : > { %p728_p2 = pnand %p727_p1, %p888_p4 }
  0x44   : > { %p733_p7 = por %p732_p6, %p731_p5 }
  0x45   : > { %p729_p3 = pneg %p728_p2 }
  0x47   : > { %p734_p9 = pnand %p733_p7, %p729_p3 }
  0x49   : > { %v308_v8 = vld [vmem:[#allocation2] sm:$0xff]  ;;  %v309_v11 = vld [vmem:[#allocation2 + $0x8] sm:$0xff] }
  0x4a   : > { %v312_v10 = vadd.f32 %v310_v9, %v308_v8  ;;  %v313_v13 = vadd.f32 %v311_v12, %v309_v11 }
  0x4c   : > { %316 = vadd.xlane.f32.xlu0 %v312_v10 }
  0x54   : > { %318 = vadd.xlane.f32.xlu0 %v313_v13 }
  0xbf   : > { %v317_v16 = vpop.xlane.xlu0 %316 }
  0xc0   : > { %v320_v17 = vmul.f32 0.03125, %v317_v16 }
  0xc2   : > { %v322_v18 = vsub.f32 %v312_v10, %v320_v17 }
  0xc4   : > { %v327_v19 = vsel %vm326_vm0, %v322_v18, 0.0 }
  0xc5   : > { %v329_v20 = vmul.f32 %v327_v19, %v327_v19 }
  0xc7   : > { %331 = vadd.xlane.f32.xlu1 %v329_v20  ;;  %v319_v21 = vpop.xlane.xlu0 %318 }
  0xc8   : > { %v321_v22 = vmul.f32 0.03125, %v319_v21 }
  0xca   : > { %v323_v23 = vsub.f32 %v313_v13, %v321_v22 }
  0xcc   : > { %v328_v24 = vsel %vm326_vm0, %v323_v23, 0.0 }
  0xcd   : > { %v330_v25 = vmul.f32 %v328_v24, %v328_v24 }
  0xcf   : > { %333 = vadd.xlane.f32.xlu1 %v330_v25 }
 0x13a   : > { %v332_v26 = vpop.xlane.xlu1 %331 }
 0x13b   : > { %v335_v27 = vmul.f32 0.03125, %v332_v26 }
 0x13d   : > { %v337_v28 = vadd.f32 1e-06, %v335_v27 }
 0x13f   : > { %634 = vrsqrt.f32 %v337_v28  ;;  %vm345_vm2 = vweird.f32 %v337_v28 }
 0x142   : > { %v334_v29 = vpop.xlane.xlu1 %333 }
 0x143   : > { %v336_v30 = vmul.f32 0.03125, %v334_v29 }
 0x145   : > { %v635_v31 = vpop.eup %634  ;;  %v338_v32 = vadd.f32 1e-06, %v336_v30 }
 0x146   : > { %v340_v33 = vmul.f32 %v635_v31, %v337_v28  ;;  %vm346_vm1 = vweird.f32 %v635_v31 }
 0x147   : > { %636 = vrsqrt.f32 %v338_v32  ;;  %vm347_vm3 = vmor %vm345_vm2, %vm346_vm1  ;;  %vm355_vm5 = vweird.f32 %v338_v32 }
 0x148   : > { %v341_v34 = vmul.f32 %v635_v31, %v340_v33 }
 0x14a   : > { %v342_v35 = vmul.f32 0.5, %v341_v34 }
 0x14c   : > { %v343_v36 = vsub.f32 1.5, %v342_v35 }
 0x14d   : > { %v637_v37 = vpop.eup %636 }
 0x14e   : > { %v344_v38 = vmul.f32 %v635_v31, %v343_v36  ;;  %v350_v39 = vmul.f32 %v637_v37, %v338_v32  ;;  %vm356_vm4 = vweird.f32 %v637_v37 }
 0x14f   : > { %vm357_vm6 = vmor %vm355_vm5, %vm356_vm4 }
 0x150   : > { %v348_v41 = vsel %vm347_vm3, %v635_v31, %v344_v38  ;;  %v351_v42 = vmul.f32 %v637_v37, %v350_v39 }
 0x151   : > { %v359_v43 = vmul.f32 %v348_v41, %v327_v19 }
 0x152   : > { %v352_v45 = vmul.f32 0.5, %v351_v42 }
 0x153   : > { %v364_v46 = vmul.f32 %v632_v40, %v359_v43 }
 0x154   : > { %v353_v47 = vsub.f32 1.5, %v352_v45 }
 0x155   : > { %v369_v48 = vadd.f32 %v633_v44, %v364_v46 }
 0x156   : > { %v354_v49 = vmul.f32 %v637_v37, %v353_v47 }
 0x157   : > { %371 = vst [vmem:[%s937_s12] sm:$0xff] %v369_v48 }
 0x158   : > { %v358_v50 = vsel %vm357_vm6, %v637_v37, %v354_v49 }
 0x159   : > { %v360_v51 = vmul.f32 %v358_v50, %v328_v24 }
 0x15b   : > { %v365_v52 = vmul.f32 %v632_v40, %v360_v51 }
 0x15d   : > { %v370_v53 = vadd.f32 %v633_v44, %v365_v52 }
 0x15f   : > { %372 = vst [vmem:[%s937_s12 + $0x8] sm:$0xff] %v370_v53 }
 0x160   : > { %737 = shalt.err (!%p734_p9)
}
 0x161   : > { %s813_s12 = smov 128   ;;  %s814_s2 = smov 8  }
 0x162   : > { %551 = dma.vmem_to_hbm [thread:$0]  (%p888_p4), %s389_s10, 256, %s391_s25, %s374_s16, %s813_s12, %s813_s12, %s814_s2  }
 0x163 PF: > { %p568_p10 = scmp.ge.s32.totalorder %s802_s0, 2  ;;  %s405_s14 = sand.u32 1, %s782_s22  }
 0x164   : > { %s406_s9 = scalar_lea.sflag [#allocation7], %s405_s14 }
 0x165   : > { %p561_p11 = pnand %p568_p10, %p895_p8 }
 0x167   : > { %p562_p12 = pneg %p561_p11 }
 0x169   : > { %777 = dma.done.wait (%p562_p12), %s406_s9, 256  }
 0x16a   : > { %779 = vsyncadd (%p562_p12), %s406_s9, 4294967040  ;;  %s28_s0 = sadd.s32 1, %s802_s0   ;;  %s1037_s18 = sld [smem:[#allocation15_spill]] }
 0x16b   : > { %p25_p13 = scmp.ge.s32.totalorder %s28_s0, 4   ;;  %s1038_s24 = sld [smem:[#allocation18_spill]] }
 0x16c   : > { %s1039_s25 = sld [smem:[#allocation16_spill]]  ;;  %s1041_s22 = smov %s786_s23 }
 0x16d   : > { %s1040_s26 = sld [smem:[#allocation17_spill]]  ;;  %27 = sbr.rel (!%p25_p13) target bundleno = 13 (0xd), region = 112 }
 0x170   : > { %s1042_s23 = smov %s1037_s18 }
 0x172   :  { %412 = vsyncpa [#allocation6], 1 }
 0x173   :  { %414 = vsyncpa [#allocation6 + $0x1], 1 }
 0x174   :  { %415 = vsyncpa [#allocation9], 1 }
 0x175   :  { %416 = vsyncpa [#allocation7], 1 }
 0x176   :  { %418 = vsyncpa [#allocation7 + $0x1], 1 }

</bundles_post_ra>
